<compile_context>
chip_gen: v7x
topology: tpu7x:2x2x1
jax: 0.10.0
libtpu: 0.0.40
codegen_flags: <defaults>
</compile_context>

<pallas_src>
import jax
import jax.numpy as jnp
from jax.experimental import pallas as pl
from jax.experimental.pallas import tpu as pltpu


# ---------------------------------------------------------------------------
# Pallas kernel: pre-folded linear denoiser + CFG mix, one spatial tile
# ---------------------------------------------------------------------------
def cfg_denoiser_kernel(z_ref, cc_ref,        # (Cz, T), (Cc, T) spatial tiles
                        wz_ref, wc_ref,       # (Cout, Cz), (Cout, Cc) folded W
                        bias_ref,             # (Cout, 1)  folded bias (f32)
                        out_ref):             # (Cout, T)
    acc = jnp.dot(wz_ref[...], z_ref[...], preferred_element_type=jnp.float32)
    acc = acc + jnp.dot(wc_ref[...], cc_ref[...],
                        preferred_element_type=jnp.float32)
    out_ref[...] = (acc + bias_ref[...]).astype(out_ref.dtype)


# ---------------------------------------------------------------------------
# Sigma-independent precomputation (do this ONCE per sampling run, not per
# denoising step): the image-CFG mix of the two c_concat conditionings.
# ---------------------------------------------------------------------------
def precompute_image_cond_mix(cond, uncond, image_cfg_scale, dtype=None):
    cc_c = cond["c_concat"][0][0]        # (Cc, H, W)
    cc_u = uncond["c_concat"][0][0]      # (Cc, H, W)
    i = jnp.asarray(image_cfg_scale, dtype=jnp.float32)
    mix = i * cc_c.astype(jnp.float32) + (1.0 - i) * cc_u.astype(jnp.float32)
    return mix.astype(dtype if dtype is not None else cc_c.dtype)


def _round_up(x, m):
    return ((x + m - 1) // m) * m


# ---------------------------------------------------------------------------
# Wrapper: fold CFG coefficients / context bias / sigma scale into the tiny
# weights, flatten spatial dims, tile over H*W with large lane-dense blocks.
# ---------------------------------------------------------------------------
def cfg_denoiser_forward(z, sigma, cond, uncond,
                         text_cfg_scale, image_cfg_scale, params,
                         cc_mix=None, max_tile=65536):
    # The module spec (einops.repeat '1 ... -> 3 ...') requires batch 1.
    assert z.shape[0] == 1, "CFGDenoiser expects batch size 1"

    W, b, Wctx = params["W"], params["b"], params["Wctx"]
    data_dtype = z.dtype                                       # bf16-friendly

    if cc_mix is None:
        # In a sampling loop, pass a precomputed cc_mix instead (it does not
        # depend on sigma), so this extra HBM pass is paid only once per run.
        cc_mix = precompute_image_cond_mix(cond, uncond, image_cfg_scale,
                                           dtype=data_dtype)

    ctx_c = cond["c_crossattn"][0][0].astype(jnp.float32)      # (S, D)
    ctx_u = uncond["c_crossattn"][0][0].astype(jnp.float32)    # (S, D)

    Cout = W.shape[0]
    Cz = z.shape[1]
    Cc = cc_mix.shape[0]
    _, _, H, Wsp = z.shape
    HW = H * Wsp

    t = jnp.float32(text_cfg_scale)
    c_scale = jax.lax.rsqrt(sigma.astype(jnp.float32)[0] ** 2 + 1.0)

    # CFG branch coefficients (branch0=cond, branch1=img-cond, branch2=uncond):
    #   res = t*out0 + (i - t)*out1 + (1 - i)*out2     (coefficients sum to 1)
    # Branch inputs: z in all 3 (net weight 1); c_concat mix handled upstream
    # (cond weight i, uncond weight 1-i == cc_mix with net weight 1);
    # cond ctx weight t, uncond ctx weight 1-t; bias b net weight 1.
    Wf = W.astype(jnp.float32)
    Wz = (c_scale * Wf[:, :Cz]).astype(data_dtype)             # (Cout, Cz)
    Wc = (c_scale * Wf[:, Cz:]).astype(data_dtype)             # (Cout, Cc)
    proj_c = jnp.mean(ctx_c, axis=0) @ Wctx.astype(jnp.float32)  # (Cout,)
    proj_u = jnp.mean(ctx_u, axis=0) @ Wctx.astype(jnp.float32)  # (Cout,)
    bias = (c_scale * (t * proj_c + (1.0 - t) * proj_u
                       + b.astype(jnp.float32)[:, 0])).reshape(Cout, 1)

    # Flatten spatial dims (reshape of a contiguous array: no extra HBM pass,
    # no dtype conversion).
    z_flat = z[0].reshape(Cz, HW)
    cc_flat = cc_mix.reshape(Cc, HW).astype(data_dtype)

    # Spatial tiling:
    #   * large 128-multiple tiles (up to max_tile lanes) to amortize the
    #     ~0.35 us per-grid-step overhead of this HBM-bound kernel;
    #   * always >=2 grid steps when HW allows, so v7x's 2 TensorCores are
    #     both used via dimension_semantics=("parallel",);
    #   * the ragged tail block (HW not a multiple of tile) is handled by
    #     Pallas block padding.
    if HW < 2 * 128:
        tile = HW                                   # single full-extent block
    else:
        num_steps = max(2, pl.cdiv(HW, max_tile))
        tile = _round_up(pl.cdiv(HW, num_steps), 128)
    grid = (pl.cdiv(HW, tile),)

    out_flat = pl.pallas_call(
        cfg_denoiser_kernel,
        out_shape=jax.ShapeDtypeStruct((Cout, HW), data_dtype),
        grid=grid,
        in_specs=[
            pl.BlockSpec((Cz, tile), lambda s: (0, s)),        # z tile
            pl.BlockSpec((Cc, tile), lambda s: (0, s)),        # cc_mix tile
            pl.BlockSpec((Cout, Cz), lambda s: (0, 0)),        # folded W (z)
            pl.BlockSpec((Cout, Cc), lambda s: (0, 0)),        # folded W (cc)
            pl.BlockSpec((Cout, 1), lambda s: (0, 0)),         # folded bias
        ],
        out_specs=pl.BlockSpec((Cout, tile), lambda s: (0, s)),
        compiler_params=pltpu.CompilerParams(
            dimension_semantics=("parallel",)),
    )(z_flat, cc_flat, Wz, Wc, bias)

    return out_flat.reshape(1, Cout, H, Wsp)


# ---------------------------------------------------------------------------
# Pure-JAX reference: faithful, *unfolded* 3-branch evaluation + CFG mix
# (exactly what CFGDenoiser.forward does with the synthetic inner model).
# ---------------------------------------------------------------------------
def reference_forward(z, sigma, cond, uncond,
                      text_cfg_scale, image_cfg_scale, params):
    W, b, Wctx = params["W"], params["b"], params["Wctx"]
    cfg_z = jnp.concatenate([z, z, z], axis=0)
    cfg_ctx = jnp.concatenate(
        [cond["c_crossattn"][0], uncond["c_crossattn"][0],
         uncond["c_crossattn"][0]], axis=0)
    cfg_concat = jnp.concatenate(
        [cond["c_concat"][0], cond["c_concat"][0],
         uncond["c_concat"][0]], axis=0)
    x = jnp.concatenate([cfg_z, cfg_concat], axis=1)
    N, Cin, H, Wsp = x.shape
    x_flat = x.reshape(N, Cin, H * Wsp)

    h = jnp.einsum("oi,nil->nol", W, x_flat)
    proj = cfg_ctx.mean(axis=1) @ Wctx                             # (3, Cout)
    c_scale = 1.0 / jnp.sqrt(sigma[0] ** 2 + 1.0)
    out3 = (h + proj[:, :, None] + b[None]) * c_scale

    out_cond, out_img_cond, out_uncond = out3[0], out3[1], out3[2]
    res = (out_uncond
           + text_cfg_scale * (out_cond - out_img_cond)
           + image_cfg_scale * (out_img_cond - out_uncond))
    return res.reshape(1, W.shape[0], H, Wsp)


if __name__ == "__main__":
    key = jax.random.PRNGKey(0)
    kz, kc, kuc, kcc, kucc, kw, kb, kwc, ks = jax.random.split(key, 9)

    B, C, H, Wsp = 1, 4, 16, 16       # latent z (module requires batch 1)
    Cc = 4                            # c_concat channels
    S, D = 8, 32                      # cross-attn seq / hidden
    Cout, Cin = C, C + Cc

    z = jax.random.normal(kz, (B, C, H, Wsp), dtype=jnp.float32)
    sigma = jnp.abs(jax.random.normal(ks, (B,), dtype=jnp.float32)) + 0.5
    cond = {
        "c_crossattn": [jax.random.normal(kc, (B, S, D), dtype=jnp.float32)],
        "c_concat": [jax.random.normal(kcc, (B, Cc, H, Wsp), dtype=jnp.float32)],
    }
    uncond = {
        "c_crossattn": [jax.random.normal(kuc, (B, S, D), dtype=jnp.float32)],
        "c_concat": [jax.random.normal(kucc, (B, Cc, H, Wsp), dtype=jnp.float32)],
    }
    text_cfg_scale, image_cfg_scale = 7.5, 1.5

    params = {
        "W": jax.random.normal(kw, (Cout, Cin), dtype=jnp.float32) * 0.1,
        "b": jax.random.normal(kb, (Cout, 1), dtype=jnp.float32) * 0.1,
        "Wctx": jax.random.normal(kwc, (D, Cout), dtype=jnp.float32) * 0.1,
    }

    # Sigma-independent part, computed once per sampling run.
    cc_mix = precompute_image_cond_mix(cond, uncond, image_cfg_scale,
                                       dtype=z.dtype)

    out = cfg_denoiser_forward(z, sigma, cond, uncond,
                               text_cfg_scale, image_cfg_scale, params,
                               cc_mix=cc_mix)
    out = jax.block_until_ready(out)

    ref = reference_forward(z, sigma, cond, uncond,
                            text_cfg_scale, image_cfg_scale, params)
    assert out.shape == (1, C, H, Wsp)
    assert jnp.allclose(out, ref, atol=1e-4, rtol=1e-4), "mismatch vs reference"
    print("KERNEL_OK")
</pallas_src>

<mosaic_0001>
module attributes {stable_mosaic.version = 11 : i64} {
  func.func @cfg_denoiser_kernel(%arg0: i32, %arg1: memref<4x128xf32, #tpu.memory_space<vmem>>, %arg2: memref<4x128xf32, #tpu.memory_space<vmem>>, %arg3: memref<4x4xf32, #tpu.memory_space<vmem>>, %arg4: memref<4x4xf32, #tpu.memory_space<vmem>>, %arg5: memref<4x1xf32, #tpu.memory_space<vmem>>, %arg6: memref<4x128xf32, #tpu.memory_space<vmem>>) attributes {dimension_semantics = [#tpu.dimension_semantics<parallel>], iteration_bounds = array<i64: 2>, scalar_prefetch = 0 : i64, scratch_operands = 0 : i64, tpu.core_type = #tpu.core_type<tc>, window_params = [{transform_indices = @transform_0, window_bounds = array<i64: 4, 128>}, {transform_indices = @transform_1, window_bounds = array<i64: 4, 128>}, {pipeline_mode = #tpu.pipeline_mode<synchronous>, transform_indices = @transform_2, window_bounds = array<i64: 4, 4>}, {pipeline_mode = #tpu.pipeline_mode<synchronous>, transform_indices = @transform_3, window_bounds = array<i64: 4, 4>}, {pipeline_mode = #tpu.pipeline_mode<synchronous>, transform_indices = @transform_4, window_bounds = array<i64: 4, 1>}, {transform_indices = @transform_5, window_bounds = array<i64: 4, 128>}]} {
    %c0 = arith.constant 0 : index
    %c0_0 = arith.constant 0 : index
    %0 = vector.load %arg3[%c0, %c0_0] : memref<4x4xf32, #tpu.memory_space<vmem>>, vector<4x4xf32>
    %c0_1 = arith.constant 0 : index
    %c0_2 = arith.constant 0 : index
    %1 = vector.load %arg1[%c0_1, %c0_2] : memref<4x128xf32, #tpu.memory_space<vmem>>, vector<4x128xf32>
    %cst = arith.constant dense<0.000000e+00> : vector<4x128xf32>
    %2 = tpu.matmul %0, %1, %cst {dimension_numbers = #tpu.dot_dimension_numbers<[1], [0], [0], [1], [0, 0, 1, 1], [], []>} : vector<4x4xf32>, vector<4x128xf32>, vector<4x128xf32> -> vector<4x128xf32>
    %c0_3 = arith.constant 0 : index
    %c0_4 = arith.constant 0 : index
    %3 = vector.load %arg4[%c0_3, %c0_4] : memref<4x4xf32, #tpu.memory_space<vmem>>, vector<4x4xf32>
    %c0_5 = arith.constant 0 : index
    %c0_6 = arith.constant 0 : index
    %4 = vector.load %arg2[%c0_5, %c0_6] : memref<4x128xf32, #tpu.memory_space<vmem>>, vector<4x128xf32>
    %cst_7 = arith.constant dense<0.000000e+00> : vector<4x128xf32>
    %5 = tpu.matmul %3, %4, %cst_7 {dimension_numbers = #tpu.dot_dimension_numbers<[1], [0], [0], [1], [0, 0, 1, 1], [], []>} : vector<4x4xf32>, vector<4x128xf32>, vector<4x128xf32> -> vector<4x128xf32>
    %6 = arith.addf %2, %5 : vector<4x128xf32>
    %c0_8 = arith.constant 0 : index
    %c0_9 = arith.constant 0 : index
    %7 = vector.load %arg5[%c0_8, %c0_9] : memref<4x1xf32, #tpu.memory_space<vmem>>, vector<4x1xf32>
    %8 = vector.broadcast %7 : vector<4x1xf32> to vector<4x128xf32>
    %9 = arith.addf %6, %8 : vector<4x128xf32>
    %c0_10 = arith.constant 0 : index
    %c0_11 = arith.constant 0 : index
    %10 = vector.load %arg6[%c0_10, %c0_11] : memref<4x128xf32, #tpu.memory_space<vmem>>, vector<4x128xf32>
    tpu.vector_store %arg6[%c0_10, %c0_11], %9 {strides = array<i32>} : memref<4x128xf32, #tpu.memory_space<vmem>>, vector<4x128xf32>,
    return
  }
  func.func @transform_0(%arg0: i32) -> (i32, i32) {
    %c0_i32 = arith.constant 0 : i32
    %c0_i32_0 = arith.constant 0 : i32
    return %c0_i32, %arg0 : i32, i32
  }
  func.func @transform_1(%arg0: i32) -> (i32, i32) {
    %c0_i32 = arith.constant 0 : i32
    %c0_i32_0 = arith.constant 0 : i32
    return %c0_i32, %arg0 : i32, i32
  }
  func.func @transform_2(%arg0: i32) -> (i32, i32) {
    %c0_i32 = arith.constant 0 : i32
    %c0_i32_0 = arith.constant 0 : i32
    %c0_i32_1 = arith.constant 0 : i32
    return %c0_i32, %c0_i32_0 : i32, i32
  }
  func.func @transform_3(%arg0: i32) -> (i32, i32) {
    %c0_i32 = arith.constant 0 : i32
    %c0_i32_0 = arith.constant 0 : i32
    %c0_i32_1 = arith.constant 0 : i32
    return %c0_i32, %c0_i32_0 : i32, i32
  }
  func.func @transform_4(%arg0: i32) -> (i32, i32) {
    %c0_i32 = arith.constant 0 : i32
    %c0_i32_0 = arith.constant 0 : i32
    %c0_i32_1 = arith.constant 0 : i32
    return %c0_i32, %c0_i32_0 : i32, i32
  }
  func.func @transform_5(%arg0: i32) -> (i32, i32) {
    %c0_i32 = arith.constant 0 : i32
    %c0_i32_0 = arith.constant 0 : i32
    return %c0_i32, %arg0 : i32, i32
  }
}

</mosaic_0001>

<bundles_post_ra>
// kernel: tpu_custom_call.1
= control target key start
LH: loop header
LB: loop body
LE: loop exit
PB: predicated region body
PF: predicated region fallthrough
CT: control target
= control target key end

     0   :  { %10 = vsyncpa [#allocation3], 0  ;;  %s912_s0 = inlined_call_operand.hbm [shape: f32[4,256], index: 0, kind: input, shape index: {}]   ;;  %s913_s1 = inlined_call_operand.vmem [shape: f32[4,256], index: 1, kind: input, shape index: {}]   ;;  %s914_s2 = inlined_call_operand.vmem [shape: f32[4,4], index: 2, kind: input, shape index: {}]   ;;  %s915_s3 = inlined_call_operand.vmem [shape: f32[4,4], index: 3, kind: input, shape index: {}]   ;;  %s916_s4 = inlined_call_operand.vmem [shape: f32[4,1], index: 4, kind: input, shape index: {}]   ;;  %s917_s5 = inlined_call_operand.hbm [shape: f32[4,256], index: 5, kind: output, shape index: {}]  }
   0x1   :  { %12 = vsyncpa [#allocation3 + $0x1], 0 }
   0x2   :  { %13 = vsyncpa [#allocation4], 0 }
   0x3   :  { %15 = vsyncpa [#allocation4 + $0x1], 0  ;;  %s733_s18 = smov 0   ;;  %s735_s19 = smov 0  }
   0x4   :  { %s737_s20 = smov 0   ;;  %s739_s21 = smov 0  }
   0x5 LB: > { %s754_s22 = sadd.s32 4294967295, %s696_s21   ;;  %s519_s23 = sadd.s32 4294967294, %s696_s21   ;;  %s696_s21 = sphi %s739_s21, %s932_s21   ;;  %s692_s20 = sphi %s737_s20, %s931_s20   ;;  %s688_s19 = sphi %s735_s19, %s930_s19   ;;  %s684_s18 = sphi %s733_s18, %s929_s18  }
   0x6   : > { %s758_s24 = sadd.s32 1, %s696_s21   ;;  %s28_s25 = sadd.s32 1, %s692_s20 }
   0x7   : > { %s25_s26 = ssub.s32 %s696_s21, %s758_s24  ;;  %p35_p0 = scmp.ne.s32.totalorder %s692_s20, %s688_s19 }
   0x8   : > { %p26_p1 = scmp.eq.s32.totalorder %s25_s26, 0  ;;  %p36_p2 = scmp.eq.s32.totalorder %s696_s21, 0 }
   0x9   : > { %p41_p3 = scmp.ne.s32.totalorder %s688_s19, %s684_s18  ;;  %p42_p4 = scmp.eq.s32.totalorder %s754_s22, 0 }
   0xa   : > { %s770_s27 = scalar_select %p26_p1, %s692_s20, %s28_s25  }
   0xb   : > { %p772_p5 = por %p36_p2, %p35_p0  ;;  %p776_p6 = por %p42_p4, %p41_p3 }
   0xc   : > { %p154_p7 = scmp.eq.s32.totalorder %s754_s22, 1  ;;  %p160_p8 = scmp.eq.s32.totalorder %s519_s23, 1 }
   0xd   : > { %p562_p10 = scmp.lt.s32.totalorder %s696_s21, 2  ;;  %s189_s7 = sand.u32 1, %s692_s20  }
   0xe   : > { %p783_p11 = por %p154_p7, %p35_p0  ;;  %p787_p12 = por %p160_p8, %p41_p3 }
   0xf   : > { %s523_s8 = sshll.u32 %s696_s21, 6  ;;  %s522_s9 = sshll.u32 %s189_s7, 2 }
  0x10   : > { %s921_s30 = scalar_select %p783_p11, 1, 0 }
  0x11   : > { %s922_s6 = scalar_select %p787_p12, 1, 0 }
  0x12   : > { %s796_s12 = scalar_lea.hbm %s912_s0, %s523_s8  ;;  %s193_s13 = scalar_lea.vmem [#allocation2], %s522_s9 }
  0x13   : > { %s200_s14 = sshll.u32 %s193_s13, 4  ;;  %p800_p13 = pnand %p562_p10, %p772_p5  ;;  %s804_s14 = int_to_ptr.vmem [resolvable:$true] %s200_s14 }
  0x14   : > { %s190_s16 = scalar_lea.sflag [#allocation3], %s189_s7  ;;  %s600_s17 = scalar_lea.hbm %s796_s12, 64 }
  0x15   : > { %p601_p2 = scmp.ne.s32.totalorder %s796_s12, %s600_s17  ;;  %p602_p3 = pneg %p800_p13 }
  0x16   : > { %s605_s26 = scalar_lea.hbm %s912_s0, 128  ;;  %p606_p5 = scmp.lt.u32.totalorder %s796_s12, %s912_s0 }
  0x17   : > { %p603_p4 = pnand %p602_p3, %p601_p2  ;;  %p607_p8 = scmp.lt.u32.totalorder %s605_s26, %s600_s17 }
  0x18   : > { %p609_p9 = scmp.lt.u32.totalorder %s600_s17, %s796_s12 }
  0x19   : > { %p604_p7 = pneg %p603_p4  ;;  %p608_p10 = por %p607_p8, %p606_p5 }
  0x1b   : > { %p610_p0 = por %p609_p9, %p608_p10 }
  0x1d   : > { %p611_p1 = pnand %p610_p0, %p604_p7 }
  0x1f   : > { %614 = shalt.err (!%p611_p1)
}
  0x20   : > { %s615_s7 = scalar_lea.vmem %s804_s14, 64  ;;  %s698_s9 = smov [#allocation2]  }
  0x21   : > { %p616_p2 = scmp.ne.s32.totalorder %s804_s14, %s615_s7  ;;  %s620_s10 = sshll.u32 %s698_s9, 4  ;;  %s621_s10 = int_to_ptr.vmem [resolvable:$false] %s620_s10 }
  0x22   : > { %s622_s11 = scalar_lea.vmem %s621_s10, 128  ;;  %p623_p11 = scmp.lt.s32.totalorder %s804_s14, %s621_s10 }
  0x23   : > { %p618_p4 = pnand %p616_p2, %p602_p3  ;;  %p624_p5 = scmp.lt.s32.totalorder %s622_s11, %s615_s7 }
  0x25   : > { %p619_p12 = pneg %p618_p4  ;;  %p625_p8 = por %p624_p5, %p623_p11 }
  0x27   : > { %p626_p9 = pnand %p625_p8, %p619_p12 }
  0x29   : > { %629 = shalt.err (!%p626_p9)
}
  0x2a   : > { %557 = dma.hbm_to_vmem [thread:$0]  (!%p800_p13), %s796_s12, 64, %s804_s14, %s190_s16  }
  0x2b   : > { %p924_p0 = scmp.lt.s32.totalorder %s696_s21, 3  ;;  %p925_p1 = scmp.ge.s32.totalorder %s696_s21, 1 }
  0x2d   : > { %p213_p3 = pnand %p925_p1, %p924_p0 }
  0x2e   : > { %s838_s13 = sand.u32 (!%p213_p3), 1, %s688_s19  }
  0x2f   : > { %216 = sbr.rel (%p213_p3) target bundleno = 293 (0x125), region = 40  ;;  %s525_s17 = sshll.u32 (!%p213_p3), %s838_s13, 2 }
  0x30   : > { %s219_s23 = scalar_lea.sflag (!%p213_p3), [#allocation3], %s838_s13  ;;  %s222_s15 = scalar_lea.vmem (!%p213_p3), [#allocation2], %s525_s17 }
  0x36   : > { %675 = dma.done.wait (%p776_p6), %s219_s23, 64  }
  0x37   : > { %677 = vsyncadd (%p776_p6), %s219_s23, 4294967232  ;;  %p253_p11 = scmp.lt.s32.totalorder %s754_s22, 1  ;;  %v699_v0 = vmov 0.0   ;;  %vm700_vm0 = vmmov 0   ;;  %v701_v1 = vmov 0   ;;  %vm265_vm1 = vcmask 1043456  }
  0x38   : > { %540 = vmatprep.subr.mxu0 %v699_v0  ;;  %545 = vmatprep.subr.mxu1 %v699_v0  ;;  %vm261_vm2 = vcmask 31744   ;;  %v258_v3 = vld [vmem:[%s222_s15] sm:$0xf]  ;;  %s533_s11 = sshll.u32 %s754_s22, 6  ;;  %s252_s23 = scalar_lea.vmem [#allocation5], %s525_s17 }
  0x39   : > { %s254_s12 = scalar_select %p253_p11, %s754_s22, 1  ;;  %542 = vmatprep.mubr.msk.f32.mxu0 %vm700_vm0, %v699_v0  ;;  %547 = vmatprep.mubr.msk.f32.mxu1 %vm700_vm0, %v699_v0  ;;  %v259_v4 = vld [vmem:[%s915_s3] sm:$0xf] }
  0x3a   : > { %599 = vset.pattern.permute.xlu0 %v701_v1  ;;  %546 = vmatpush3.msk.msra.mxu1 %vm265_vm1, %v258_v3  ;;  %v257_v5 = vld [vmem:[%s914_s2] sm:$0xf]  ;;  %s437_s15 = sshll.u32 %s252_s23, 4  ;;  %s868_s16 = scalar_lea.hbm %s917_s5, %s533_s11  ;;  %s870_s15 = int_to_ptr.vmem [resolvable:$true] %s437_s15 }
  0x3b   : > { %s527_s14 = sshll.u32 %s254_s12, 2  ;;  %v415_v6 = vld [vmem:[%s916_s4] sm:$0xf]  ;;  %548 = vmatmul.mubr.msk.f32.vlgmr.msra.gmra.mrb[0].mxu1 %vm261_vm2, %v257_v5  ;;  %s424_s25 = scalar_lea.sflag [#allocation4], %s838_s13 }
  0x3c   : > { %s256_s26 = scalar_lea.vmem %s913_s1, %s527_s14  ;;  %418 = vperm.xlu0 %599, %v415_v6   ;;  %s630_s22 = scalar_lea.vmem %s870_s15, 64 }
  0x3d   : > { %v260_v2 = vld [vmem:[%s256_s26] sm:$0xf]  ;;  %p631_p6 = scmp.ne.s32.totalorder %s870_s15, %s630_s22  ;;  %p926_p12 = scmp.ne.s32.totalorder %s921_s30, 0 }
  0x3e   : > { %541 = vmatpush3.msk.msra.mxu0 %vm265_vm1, %v260_v2  ;;  %s702_s17 = smov [#allocation5]  }
  0x3f   : > { %543 = vmatmul.mubr.msk.f32.vlgmr.msra.gmra.mrb[0].mxu0 %vm261_vm2, %v259_v4  ;;  %p632_p13 = pnand %p631_p6, %p926_p12  ;;  %s634_s26 = sshll.u32 %s702_s17, 4  ;;  %s635_s26 = int_to_ptr.vmem [resolvable:$false] %s634_s26 }
  0x40   : > { %s636_s29 = scalar_lea.vmem %s635_s26, 128  ;;  %p637_p10 = scmp.lt.s32.totalorder %s870_s15, %s635_s26 }
  0x41   : > { %p633_p7 = pneg %p632_p13  ;;  %p638_p2 = scmp.lt.s32.totalorder %s636_s29, %s630_s22 }
  0x43   : > { %p639_p4 = por %p638_p2, %p637_p10 }
  0x45   : > { %p640_p5 = pnand %p639_p4, %p633_p7 }
  0xbb   : > { %v419_v7 = vpop.permute.xlu0 %418 }
 0x10e   : > { %v411_v9 = vpop.f32.mrb[0].mxu1 }
 0x10f   : > { %v549_v12 = vpop.f32.mrb[1].mxu1 }
 0x112   : > { %v335_v8 = vpop.f32.mrb[0].mxu0 }
 0x113   : > { %v412_v10 = vadd.f32 %v411_v9, %v335_v8  ;;  %v544_v11 = vpop.f32.mrb[1].mxu0 }
 0x115   : > { %v421_v13 = vadd.f32 %v419_v7, %v412_v10 }
 0x117   : > { %422 = vst [vmem:[%s252_s23] sm:$0xf] %v421_v13 }
 0x118   : > { %643 = shalt.err (!%p640_p5)
}
 0x119   : > { %s644_s13 = scalar_lea.hbm %s868_s16, 64  ;;  %s648_s7 = scalar_lea.hbm %s917_s5, 128 }
 0x11a   : > { %p645_p8 = scmp.ne.s32.totalorder %s868_s16, %s644_s13  ;;  %p649_p1 = scmp.lt.u32.totalorder %s868_s16, %s917_s5 }
 0x11b   : > { %p650_p3 = scmp.lt.u32.totalorder %s648_s7, %s644_s13  ;;  %p652_p6 = scmp.lt.u32.totalorder %s644_s13, %s868_s16 }
 0x11c   : > { %p646_p9 = pnand %p645_p8, %p926_p12 }
 0x11d   : > { %p651_p11 = por %p650_p3, %p649_p1 }
 0x11e   : > { %p647_p0 = pneg %p646_p9 }
 0x11f   : > { %p653_p13 = por %p652_p6, %p651_p11 }
 0x121   : > { %p654_p7 = pnand %p653_p13, %p647_p0 }
 0x123   : > { %657 = shalt.err (!%p654_p7)
}
 0x124   : > { %552 = dma.vmem_to_hbm [thread:$0]  (%p926_p12), %s870_s15, 64, %s868_s16, %s424_s25  }
 0x125 PF: > { %s449_s11 = sand.u32 1, %s684_s18   ;;  %p927_p10 = scmp.ne.s32.totalorder %s922_s6, 0 }
 0x126   : > { %p928_p2 = scmp.ge.s32.totalorder %s696_s21, 2  ;;  %s450_s23 = scalar_lea.sflag [#allocation4], %s449_s11 }
 0x128   : > { %p559_p4 = pnand %p928_p2, %p927_p10 }
 0x12a   : > { %679 = dma.done.wait (!%p559_p4), %s450_s23, 64  }
 0x12b   : > { %681 = vsyncadd (!%p559_p4), %s450_s23, 4294967232  ;;  %p18_p5 = scmp.ge.s32.totalorder %s758_s24, 4   ;;  %s929_s18 = smov %s688_s19 }
 0x12c   : > { %s930_s19 = smov %s692_s20  ;;  %s931_s20 = smov %s770_s27 }
 0x12d   : > { %s932_s21 = smov %s758_s24  ;;  %20 = sbr.rel (!%p18_p5) target bundleno = 5 (0x5), region = 88 }
 0x134   :  { %455 = vsyncpa [#allocation3], 1 }
 0x135   :  { %457 = vsyncpa [#allocation3 + $0x1], 1 }
 0x136   :  { %458 = vsyncpa [#allocation4], 1 }
 0x137   :  { %460 = vsyncpa [#allocation4 + $0x1], 1 }

</bundles_post_ra>
